<compile_context>
chip_gen: v7x
topology: tpu7x:2x2x1
jax: 0.10.0
libtpu: 0.0.40
codegen_flags: <defaults>
</compile_context>

<pallas_src>
import math

import jax
import jax.numpy as jnp
from jax.experimental import pallas as pl
from jax.experimental.pallas import tpu as pltpu

DROPOUT_P = 0.5
ALPHA = 0.2
OUT_LANES = 128                                   # packed output width: [z | q | zero pad]
_KEEP_PROB = 1.0 - DROPOUT_P
_KEEP_SCALE = 1.0 / _KEEP_PROB


def _parallel_params():
    # Single row-tile grid axis; "parallel" lets v7x's two TensorCores split the rows.
    return pltpu.CompilerParams(dimension_semantics=("parallel",))


# ---------------------------------------------------------------------------
# Stages A / C: tiny row-tiled matmul (x @ W1 and h1 @ W2).  Hoisted out of the
# adj contraction so the small-K (64/32) matmuls run once per row, not per tile.
# ---------------------------------------------------------------------------
def _matmul_kernel(a_ref, w_ref, o_ref):
    o_ref[...] = jnp.dot(a_ref[...], w_ref[...],
                         preferred_element_type=jnp.float32).astype(o_ref.dtype)


def _row_tiled_matmul(a, w, tm):
    n, k = a.shape
    kout = w.shape[1]
    return pl.pallas_call(
        _matmul_kernel,
        out_shape=jax.ShapeDtypeStruct((n, kout), jnp.bfloat16),
        grid_spec=pltpu.PrefetchScalarGridSpec(
            num_scalar_prefetch=0,
            grid=(n // tm,),
            in_specs=[pl.BlockSpec((tm, k), lambda i: (i, 0)),
                      pl.BlockSpec((k, kout), lambda i: (0, 0))],
            out_specs=pl.BlockSpec((tm, kout), lambda i: (i, 0)),
        ),
        compiler_params=_parallel_params(),
    )(a, w)


# ---------------------------------------------------------------------------
# Stage B: GCN layer 1 over adj row tiles: relu(adj_tile @ s1 + b1) followed by
# inverted dropout, fused as a single multiply with a streamed keep/scale mask.
# ---------------------------------------------------------------------------
def _gcn1_kernel(adj_ref, s1_ref, b1_ref, mask_ref, h1_ref):
    h = jnp.dot(adj_ref[...], s1_ref[...], preferred_element_type=jnp.float32)
    h = jnp.maximum(h + b1_ref[...], 0.0)                 # bias + ReLU
    h = h * mask_ref[...].astype(jnp.float32)             # inverted dropout (0 or 1/keep)
    h1_ref[...] = h.astype(h1_ref.dtype)


def _gcn_layer1(adj_bf, s1, b1, mask_scale, tm):
    n = adj_bf.shape[0]
    nhid1 = s1.shape[1]
    return pl.pallas_call(
        _gcn1_kernel,
        out_shape=jax.ShapeDtypeStruct((n, nhid1), jnp.bfloat16),
        grid_spec=pltpu.PrefetchScalarGridSpec(
            num_scalar_prefetch=0,
            grid=(n // tm,),
            in_specs=[pl.BlockSpec((tm, n), lambda i: (i, 0)),         # adj row tile
                      pl.BlockSpec((n, nhid1), lambda i: (0, 0)),      # resident s1
                      pl.BlockSpec((1, nhid1), lambda i: (0, 0)),      # bias
                      pl.BlockSpec((tm, nhid1), lambda i: (i, 0))],    # dropout mask tile
            out_specs=pl.BlockSpec((tm, nhid1), lambda i: (i, 0)),
        ),
        compiler_params=_parallel_params(),
    )(adj_bf, s1, b1, mask_scale)


# ---------------------------------------------------------------------------
# Stage D: GCN layer 2 + Student-t soft assignment, packed lane-dense output.
# ---------------------------------------------------------------------------
def _gcn2_cluster_kernel(adj_ref, s2_ref, b2_ref, mu_ref, musq_ref, out_ref):
    z = jnp.dot(adj_ref[...], s2_ref[...], preferred_element_type=jnp.float32)
    z = z + b2_ref[...]                                   # (TM, nhid2) f32

    # d2 = |z|^2 + |mu|^2 - 2 * z @ mu^T  (MXU instead of a broadcast diff tensor).
    mu = mu_ref[...]
    z_sq = jnp.sum(z * z, axis=1, keepdims=True)          # (TM, 1)
    cross = jax.lax.dot_general(                          # (TM, C) = z . mu^T
        z, mu, (((1,), (1,)), ((), ())), preferred_element_type=jnp.float32)
    d2 = jnp.maximum(z_sq + musq_ref[...] - 2.0 * cross, 0.0)

    q = 1.0 / (1.0 + d2 / ALPHA + 1e-6)
    # Reference computes (q ** (alpha+1)) / 2; the constant 1/2 cancels exactly under
    # the row normalization, so it is dropped here.
    q = q ** (ALPHA + 1.0)
    q = q / jnp.sum(q, axis=1, keepdims=True)

    # Lane-dense packed writeback: [z | q | zeros] fills the full 128-lane block, so the
    # per-tile HBM writeback is one dense 128-lane block DMA (no narrow output arrays).
    pad = jnp.zeros((z.shape[0], out_ref.shape[1] - z.shape[1] - q.shape[1]), jnp.float32)
    out_ref[...] = jnp.concatenate([z, q, pad], axis=1)


def _gcn_layer2_cluster(adj_bf, s2, b2, mu, mu_sq, tm):
    n = adj_bf.shape[0]
    nhid2 = s2.shape[1]
    n_clusters = mu.shape[0]
    assert nhid2 + n_clusters <= OUT_LANES
    return pl.pallas_call(
        _gcn2_cluster_kernel,
        out_shape=jax.ShapeDtypeStruct((n, OUT_LANES), jnp.float32),
        grid_spec=pltpu.PrefetchScalarGridSpec(
            num_scalar_prefetch=0,
            grid=(n // tm,),
            in_specs=[pl.BlockSpec((tm, n), lambda i: (i, 0)),            # adj row tile
                      pl.BlockSpec((n, nhid2), lambda i: (0, 0)),         # resident s2
                      pl.BlockSpec((1, nhid2), lambda i: (0, 0)),         # bias
                      pl.BlockSpec((n_clusters, nhid2), lambda i: (0, 0)),  # mu
                      pl.BlockSpec((1, n_clusters), lambda i: (0, 0))],     # |mu|^2 row
            out_specs=pl.BlockSpec((tm, OUT_LANES), lambda i: (i, 0)),
        ),
        compiler_params=_parallel_params(),
    )(adj_bf, s2, b2, mu, mu_sq)


# ---------------------------------------------------------------------------
# Wrapper: full GC_DEC forward.
# ---------------------------------------------------------------------------
def gc_dec_forward(x, adj, w1, b1, w2, b2, mu, dropout_key, *, tm=128,
                   return_intermediates=False):
    """GC_DEC forward. Returns (z, q) like the PyTorch module."""
    n = x.shape[0]
    nhid1 = w1.shape[1]
    assert adj.shape == (n, n)
    assert n % tm == 0, "demo wrapper expects the node count to divide the row tile"

    # bf16 operands halve the dominant adj HBM traffic; all MXU accumulation is f32.
    x_bf = x.astype(jnp.bfloat16)
    adj_bf = adj.astype(jnp.bfloat16)
    w1_bf = w1.astype(jnp.bfloat16)
    w2_bf = w2.astype(jnp.bfloat16)

    # Inverted-dropout keep/scale mask (values 0 or 1/keep_prob, exactly representable in
    # bf16 for p=0.5).  (N, nhid1) bf16 is negligible HBM traffic vs. the (N, N) adj.
    keep = jax.random.bernoulli(dropout_key, _KEEP_PROB, (n, nhid1))
    mask_scale = (keep.astype(jnp.float32) * _KEEP_SCALE).astype(jnp.bfloat16)

    # Tiny constant for the Student-t distance identity.
    mu_sq = jnp.sum(mu * mu, axis=1)[None, :].astype(jnp.float32)       # (1, C)

    s1 = _row_tiled_matmul(x_bf, w1_bf, tm)                  # (N, nhid1) bf16
    h1 = _gcn_layer1(adj_bf, s1, b1, mask_scale, tm)         # (N, nhid1) bf16
    s2 = _row_tiled_matmul(h1, w2_bf, tm)                    # (N, nhid2) bf16
    zq = _gcn_layer2_cluster(adj_bf, s2, b2, mu, mu_sq, tm)  # (N, 128)   f32

    nhid2, n_clusters = w2.shape[1], mu.shape[0]
    z = zq[:, :nhid2]
    q = zq[:, nhid2:nhid2 + n_clusters]
    if return_intermediates:
        return z, q, (s1, h1, s2, mask_scale)
    return z, q


if __name__ == "__main__":
    # Small shapes consistent with the module: N nodes, nfeat -> nhid1 -> nhid2.
    N, NFEAT, NHID1, NHID2, N_CLUSTERS = 256, 64, 32, 16, 8
    TM = 128                                                 # -> grid of 2 row tiles

    key = jax.random.PRNGKey(0)
    kx, kadj, kw1, kb1, kw2, kb2, kmu, kdrop = jax.random.split(key, 8)

    x = jax.random.normal(kx, (N, NFEAT), dtype=jnp.float32)
    a = jax.random.uniform(kadj, (N, N), dtype=jnp.float32)
    adj = a / jnp.sum(a, axis=1, keepdims=True)              # row-normalized dense adj

    # Parameter init mirroring GraphConvolution.reset_parameters.
    stdv1 = 1.0 / math.sqrt(NHID1)
    w1 = jax.random.uniform(kw1, (NFEAT, NHID1), jnp.float32, -stdv1, stdv1)
    b1 = jax.random.uniform(kb1, (1, NHID1), jnp.float32, -stdv1, stdv1)
    stdv2 = 1.0 / math.sqrt(NHID2)
    w2 = jax.random.uniform(kw2, (NHID1, NHID2), jnp.float32, -stdv2, stdv2)
    b2 = jax.random.uniform(kb2, (1, NHID2), jnp.float32, -stdv2, stdv2)
    mu = jax.random.normal(kmu, (N_CLUSTERS, NHID2), dtype=jnp.float32)

    z, q, (s1, h1, s2, mask_scale) = gc_dec_forward(
        x, adj, w1, b1, w2, b2, mu, kdrop, tm=TM, return_intermediates=True)
    jax.block_until_ready((z, q))
    assert z.shape == (N, NHID2) and q.shape == (N, N_CLUSTERS)

    # --- verification: reference mirrors the kernel's bf16-operand / f32-acc flow ---
    f32 = jnp.float32
    x_bf = x.astype(jnp.bfloat16)
    adj_bf = adj.astype(jnp.bfloat16)
    w1_bf = w1.astype(jnp.bfloat16)
    w2_bf = w2.astype(jnp.bfloat16)

    s1_ref = jnp.dot(x_bf, w1_bf, preferred_element_type=f32).astype(jnp.bfloat16)
    assert jnp.allclose(s1.astype(f32), s1_ref.astype(f32), atol=1e-2, rtol=2e-2)

    # Layer 1 with the exact same dropout mask as the kernel (generated in the wrapper).
    relu_ref = jnp.maximum(jnp.dot(adj_bf, s1, preferred_element_type=f32) + b1, 0.0)
    h1_ref = (relu_ref * mask_scale.astype(f32)).astype(jnp.bfloat16)
    assert jnp.allclose(h1.astype(f32), h1_ref.astype(f32), atol=1e-2, rtol=2e-2)

    s2_ref = jnp.dot(h1, w2_bf, preferred_element_type=f32).astype(jnp.bfloat16)
    assert jnp.allclose(s2.astype(f32), s2_ref.astype(f32), atol=1e-2, rtol=2e-2)

    z_ref = jnp.dot(adj_bf, s2, preferred_element_type=f32) + b2
    assert jnp.allclose(z, z_ref, atol=5e-3, rtol=5e-3)

    # q reference uses the ORIGINAL broadcast-difference formula including the '/ 2.0'
    # (which cancels under normalization), computed from the kernel's own z to validate
    # the in-kernel matmul-identity rewrite of the Student-t distance.
    d2_ref = jnp.sum((z[:, None, :] - mu[None, :, :]) ** 2, axis=2)
    q_ref = 1.0 / (1.0 + d2_ref / ALPHA + 1e-6)
    q_ref = q_ref ** (ALPHA + 1.0) / 2.0
    q_ref = q_ref / jnp.sum(q_ref, axis=1, keepdims=True)
    assert jnp.allclose(q, q_ref, atol=1e-3, rtol=5e-3)
    assert jnp.allclose(jnp.sum(q, axis=1), 1.0, atol=5e-3)

    print("KERNEL_OK")
</pallas_src>

<mosaic_0001>
module attributes {stable_mosaic.version = 11 : i64} {
  func.func @_matmul_kernel(%arg0: i32, %arg1: memref<128x64xbf16, #tpu.memory_space<vmem>>, %arg2: memref<64x32xbf16, #tpu.memory_space<vmem>>, %arg3: memref<128x32xbf16, #tpu.memory_space<vmem>>) attributes {dimension_semantics = [#tpu.dimension_semantics<parallel>], iteration_bounds = array<i64: 2>, scalar_prefetch = 0 : i64, scratch_operands = 0 : i64, tpu.core_type = #tpu.core_type<tc>, window_params = [{transform_indices = @transform_0, window_bounds = array<i64: 128, 64>}, {pipeline_mode = #tpu.pipeline_mode<synchronous>, transform_indices = @transform_1, window_bounds = array<i64: 64, 32>}, {transform_indices = @transform_2, window_bounds = array<i64: 128, 32>}]} {
    %c0 = arith.constant 0 : index
    %c0_0 = arith.constant 0 : index
    %0 = vector.load %arg1[%c0, %c0_0] : memref<128x64xbf16, #tpu.memory_space<vmem>>, vector<128x64xbf16>
    %c0_1 = arith.constant 0 : index
    %c0_2 = arith.constant 0 : index
    %1 = vector.load %arg2[%c0_1, %c0_2] : memref<64x32xbf16, #tpu.memory_space<vmem>>, vector<64x32xbf16>
    %cst = arith.constant dense<0.000000e+00> : vector<128x32xf32>
    %2 = tpu.matmul %0, %1, %cst {dimension_numbers = #tpu.dot_dimension_numbers<[1], [0], [0], [1], [0, 0, 1, 1], [], []>} : vector<128x64xbf16>, vector<64x32xbf16>, vector<128x32xf32> -> vector<128x32xf32>
    %3 = arith.truncf %2 : vector<128x32xf32> to vector<128x32xbf16>
    %c0_3 = arith.constant 0 : index
    %c0_4 = arith.constant 0 : index
    %4 = vector.load %arg3[%c0_3, %c0_4] : memref<128x32xbf16, #tpu.memory_space<vmem>>, vector<128x32xbf16>
    tpu.vector_store %arg3[%c0_3, %c0_4], %3 {strides = array<i32>} : memref<128x32xbf16, #tpu.memory_space<vmem>>, vector<128x32xbf16>,
    return
  }
  func.func @transform_0(%arg0: i32) -> (i32, i32) {
    %c0_i32 = arith.constant 0 : i32
    %c0_i32_0 = arith.constant 0 : i32
    return %arg0, %c0_i32 : i32, i32
  }
  func.func @transform_1(%arg0: i32) -> (i32, i32) {
    %c0_i32 = arith.constant 0 : i32
    %c0_i32_0 = arith.constant 0 : i32
    %c0_i32_1 = arith.constant 0 : i32
    return %c0_i32, %c0_i32_0 : i32, i32
  }
  func.func @transform_2(%arg0: i32) -> (i32, i32) {
    %c0_i32 = arith.constant 0 : i32
    %c0_i32_0 = arith.constant 0 : i32
    return %arg0, %c0_i32 : i32, i32
  }
}

</mosaic_0001>

<bundles_post_ra>
// kernel: tpu_custom_call.1
= control target key start
LH: loop header
LB: loop body
LE: loop exit
PB: predicated region body
PF: predicated region fallthrough
CT: control target
= control target key end

     0   :  { %s645_s9 = smov 0   ;;  %s723_s0 = inlined_call_operand.vmem [shape: bf16[256,64], index: 0, kind: input, shape index: {}]   ;;  %s724_s1 = inlined_call_operand.vmem [shape: bf16[64,32], index: 1, kind: input, shape index: {}]   ;;  %s725_s2 = inlined_call_operand.vmem [shape: bf16[256,32], index: 2, kind: output, shape index: {}]  }
   0x1 LB: > { %s495_s10 = sadd.s32 4294967295, %s628_s9   ;;  %p499_p0 = scmp.ge.s32.totalorder %s628_s9, 1  ;;  %s628_s9 = sphi %s645_s9, %s12_s9  }
   0x2   : > { %p113_p1 = scmp.lt.s32.totalorder %s628_s9, 3 }
   0x4   : > { %p114_p2 = pnand %p499_p0, %p113_p1 }
   0x5   : > { %v610_v0 = vld [vmem:[%s724_s1] sm:$0xff] (!%p114_p2)   ;;  %s500_s13 = sshll.u32 (!%p114_p2), %s495_s10, 4  ;;  %v611_v1 = vld [vmem:[%s724_s1 + $0x8] sm:$0xff] (!%p114_p2)   ;;  %v612_v2 = vld [vmem:[%s724_s1 + $0x10] sm:$0xff] (!%p114_p2)   ;;  %vm236_vm0 = vcmask (!%p114_p2), 523264   ;;  %vm422_vm1 = vcmask (!%p114_p2), 257024  }
   0x6   : > { %117 = sbr.rel (%p114_p2) target bundleno = 248 (0xf8), region = 28  ;;  %p136_p3 = scmp.lt.s32.totalorder (!%p114_p2), %s500_s13, 31  ;;  %570 = vmatprep.subr.bf16.mxu0 (!%p114_p2), %v610_v0  ;;  %594 = vmatprep.subr.bf16.mxu1 (!%p114_p2), %v610_v0  ;;  %v613_v3 = vld [vmem:[%s724_s1 + $0x18] sm:$0xff] (!%p114_p2)  }
   0x7   : > { %571 = vmatpush3.bf16.msra.mxu0 (!%p114_p2), %v610_v0  ;;  %598 = vmatpush3.bf16.msra.mxu1 (!%p114_p2), %v610_v0 }
   0x8   : > { %572 = vmatprep.subr.bf16.mxu0 (!%p114_p2), %v611_v1  ;;  %595 = vmatprep.subr.bf16.mxu1 (!%p114_p2), %v611_v1 }
   0xb   : > { %573 = vmatpush3.bf16.msra.mxu0 (!%p114_p2), %v611_v1  ;;  %599 = vmatpush3.bf16.msra.mxu1 (!%p114_p2), %v611_v1 }
   0xc   : > { %574 = vmatprep.subr.bf16.mxu0 (!%p114_p2), %v612_v2  ;;  %596 = vmatprep.subr.bf16.mxu1 (!%p114_p2), %v612_v2 }
   0xd   : > { %s727_s13 = smov (!%p136_p3, %s500_s13), 31 }
   0xe   : > { %s501_s18 = sshll.u32 %s727_s13, 2 }
   0xf   : > { %s139_s23 = scalar_lea.vmem %s723_s0, %s501_s18  ;;  %575 = vmatpush3.bf16.msra.mxu0 %v612_v2  ;;  %600 = vmatpush3.bf16.msra.mxu1 %v612_v2  ;;  %s686_s26 = scalar_lea.vmem %s725_s2, %s501_s18 }
  0x10   : > { %v614_v4 = vld [vmem:[%s139_s23] sm:$0xff]   ;;  %576 = vmatprep.subr.bf16.mxu0 %v613_v3  ;;  %597 = vmatprep.subr.bf16.mxu1 %v613_v3  ;;  %v616_v6 = vld [vmem:[%s139_s23 + $0x8] sm:$0xff]   ;;  %v618_v8 = vld [vmem:[%s139_s23 + $0x10] sm:$0xff]  }
  0x11   : > { %v615_v5 = vld [vmem:[%s139_s23 + $0x20] sm:$0xff]   ;;  %578 = vmatprep.mubr.msk.bf16.mxu0 %vm236_vm0, %v614_v4  ;;  %v617_v7 = vld [vmem:[%s139_s23 + $0x28] sm:$0xff]   ;;  %v619_v9 = vld [vmem:[%s139_s23 + $0x30] sm:$0xff]  }
  0x12   : > { %586 = vmatprep.mubr.msk.bf16.mxu1 %vm236_vm0, %v615_v5  ;;  %v620_v10 = vld [vmem:[%s139_s23 + $0x18] sm:$0xff]  }
  0x13   : > { %577 = vmatpush3.bf16.msra.mxu0 %v613_v3  ;;  %601 = vmatpush3.bf16.msra.mxu1 %v613_v3  ;;  %v621_v11 = vld [vmem:[%s139_s23 + $0x38] sm:$0xff]  }
  0x16   : > { %579 = vmatmul.mubr.msk.bf16.vlgmr.msra.gmra.mrb[0].mxu0 %vm236_vm0, %v616_v6  ;;  %587 = vmatmul.mubr.msk.bf16.vlgmr.msra.gmra.mrb[0].mxu1 %vm236_vm0, %v617_v7 }
  0x17   : > { %582 = vmatprep.mubr.msk.bf16.mxu0 %vm236_vm0, %v618_v8  ;;  %590 = vmatprep.mubr.msk.bf16.mxu1 %vm236_vm0, %v619_v9 }
  0x1e   : > { %583 = vmatmul.mubr.msk.bf16.gmra.mrb[4].mxu0 %vm236_vm0, %v620_v10  ;;  %591 = vmatmul.mubr.msk.bf16.gmra.mrb[4].mxu1 %vm236_vm0, %v621_v11 }
  0xe9   : > { %v580_v12 = vpop.f32.mrb[0].mxu0  ;;  %v588_v13 = vpop.f32.mrb[0].mxu1 }
  0xea   : > { %v544_v14 = vpack.c.bf16 %v580_v12, %v580_v12  ;;  %v552_v15 = vpack.c.bf16 %v588_v13, %v588_v13  ;;  %v295_v16 = vpop.f32.mrb[1].mxu0  ;;  %v327_v17 = vpop.f32.mrb[1].mxu1 }
  0xeb   : > { %v542_v18 = vpack.c.bf16 %v295_v16, %v295_v16  ;;  %v550_v19 = vpack.c.bf16 %v327_v17, %v327_v17  ;;  %v581_v20 = vpop.f32.mrb[2].mxu0  ;;  %v589_v21 = vpop.f32.mrb[2].mxu1 }
  0xec   : > { %425 = vst.msk [vmem:[%s686_s26 + $0x8] sm:$0xf] %vm422_vm1, %v544_v14  ;;  %433 = vst.msk [vmem:[%s686_s26 + $0x28] sm:$0xf] %vm422_vm1, %v552_v15  ;;  %v545_v22 = vpack.c.bf16 %v581_v20, %v581_v20  ;;  %v553_v23 = vpack.c.bf16 %v589_v21, %v589_v21  ;;  %v298_v24 = vpop.f32.mrb[3].mxu0  ;;  %v330_v25 = vpop.f32.mrb[3].mxu1 }
  0xed   : > { %423 = vst.msk [vmem:[%s686_s26] sm:$0xf] %vm422_vm1, %v542_v18  ;;  %431 = vst.msk [vmem:[%s686_s26 + $0x20] sm:$0xf] %vm422_vm1, %v550_v19  ;;  %v543_v26 = vpack.c.bf16 %v298_v24, %v298_v24  ;;  %v551_v27 = vpack.c.bf16 %v330_v25, %v330_v25 }
  0xee   : > { %426 = vst.msk [vmem:[%s686_s26 + $0xc] sm:$0xf] %vm422_vm1, %v545_v22  ;;  %434 = vst.msk [vmem:[%s686_s26 + $0x2c] sm:$0xf] %vm422_vm1, %v553_v23 }
  0xef   : > { %424 = vst.msk [vmem:[%s686_s26 + $0x4] sm:$0xf] %vm422_vm1, %v543_v26  ;;  %432 = vst.msk [vmem:[%s686_s26 + $0x24] sm:$0xf] %vm422_vm1, %v551_v27 }
  0xf1   : > { %v584_v28 = vpop.f32.mrb[4].mxu0  ;;  %v592_v29 = vpop.f32.mrb[4].mxu1 }
  0xf2   : > { %v548_v30 = vpack.c.bf16 %v584_v28, %v584_v28  ;;  %v556_v31 = vpack.c.bf16 %v592_v29, %v592_v29  ;;  %v311_v32 = vpop.f32.mrb[5].mxu0  ;;  %v343_v33 = vpop.f32.mrb[5].mxu1 }
  0xf3   : > { %v546_v34 = vpack.c.bf16 %v311_v32, %v311_v32  ;;  %v554_v35 = vpack.c.bf16 %v343_v33, %v343_v33  ;;  %v585_v36 = vpop.f32.mrb[6].mxu0  ;;  %v593_v37 = vpop.f32.mrb[6].mxu1 }
  0xf4   : > { %429 = vst.msk [vmem:[%s686_s26 + $0x18] sm:$0xf] %vm422_vm1, %v548_v30  ;;  %437 = vst.msk [vmem:[%s686_s26 + $0x38] sm:$0xf] %vm422_vm1, %v556_v31  ;;  %v549_v38 = vpack.c.bf16 %v585_v36, %v585_v36  ;;  %v557_v39 = vpack.c.bf16 %v593_v37, %v593_v37  ;;  %v314_v40 = vpop.f32.mrb[7].mxu0  ;;  %v346_v41 = vpop.f32.mrb[7].mxu1 }
  0xf5   : > { %427 = vst.msk [vmem:[%s686_s26 + $0x10] sm:$0xf] %vm422_vm1, %v546_v34  ;;  %435 = vst.msk [vmem:[%s686_s26 + $0x30] sm:$0xf] %vm422_vm1, %v554_v35  ;;  %v547_v42 = vpack.c.bf16 %v314_v40, %v314_v40  ;;  %v555_v43 = vpack.c.bf16 %v346_v41, %v346_v41 }
  0xf6   : > { %430 = vst.msk [vmem:[%s686_s26 + $0x1c] sm:$0xf] %vm422_vm1, %v549_v38  ;;  %438 = vst.msk [vmem:[%s686_s26 + $0x3c] sm:$0xf] %vm422_vm1, %v557_v39 }
  0xf7   : > { %428 = vst.msk [vmem:[%s686_s26 + $0x14] sm:$0xf] %vm422_vm1, %v547_v42  ;;  %436 = vst.msk [vmem:[%s686_s26 + $0x34] sm:$0xf] %vm422_vm1, %v555_v43 }
  0xf8 PF: > { %s12_s9 = sadd.s32 1, %s628_s9  }
  0xf9   : > { %p9_p4 = scmp.ge.s32.totalorder %s12_s9, 4  }
  0xfb   :  { %11 = sbr.rel (!%p9_p4) target bundleno = 1 (0x1), region = 58 }

</bundles_post_ra>
